<compile_context>
chip_gen: v6e
topology: v6e:2x2x1
jax: 0.10.0
libtpu: 0.0.40
codegen_flags: <defaults>
</compile_context>

<pallas_src>
import functools
import math

import jax
import jax.numpy as jnp
import numpy as np
from jax.experimental import pallas as pl
from jax.experimental.pallas import tpu as pltpu


def _sru_kernel(x_ref, coef_ref, sel_ref, selt_ref, o_ref, *,
                n_per_group, eps, thr, roll_shift, valid_cols, masked):
    x = x_ref[...].astype(jnp.float32)           # (L, HWp), rows channel-major
    gw = coef_ref[:, 0:1]                        # gamma * w_gamma  (per row)
    bw = coef_ref[:, 1:2]                        # beta  * w_gamma  (per row)
    sel = sel_ref[...]                           # (BG, L) one-hot group selector
    selt = selt_ref[...]                         # (L, BG)

    inv_n = 1.0 / n_per_group
    inv_nm1 = 1.0 / max(n_per_group - 1.0, 1.0)

    # ---- pass 1: per-(sample, group) mean ---------------------------------
    row_sum = jnp.sum(x, axis=1, keepdims=True)                        # (L, 1)
    g_mean = jnp.dot(sel, row_sum, preferred_element_type=jnp.float32) * inv_n
    mean_r = jnp.dot(selt, g_mean, preferred_element_type=jnp.float32)  # (L, 1)

    # ---- pass 2: unbiased std (two-pass, matches torch.std numerics) ------
    d = x - mean_r
    dsq = d * d
    if masked:                                   # exclude zero-padded lanes
        lane = jax.lax.broadcasted_iota(jnp.int32, x.shape, 1)
        dsq = jnp.where(lane < valid_cols, dsq, 0.0)
    row_ssq = jnp.sum(dsq, axis=1, keepdims=True)                      # (L, 1)
    g_var = jnp.dot(sel, row_ssq, preferred_element_type=jnp.float32) * inv_nm1
    g_rstd = 1.0 / (jnp.sqrt(g_var) + eps)       # exact; tiny (BG,1) tile
    rstd_r = jnp.dot(selt, g_rstd, preferred_element_type=jnp.float32)  # (L, 1)

    # ---- gate: sigmoid(((x-mean)*rstd*gamma + beta)*w_gamma) >= gate ------
    #      <=>   d*(rstd*gamma*w_gamma) + beta*w_gamma >= logit(gate)
    k = rstd_r * gw
    info = d * k + bw >= thr                                           # (L, HWp)

    x1 = jnp.where(info, x, 0.0)                 # informative part
    x2 = x - x1                                  # non-informative part
    # reconstruct: swap channel halves within each sample.  With channel-major
    # interleaved rows this is a single full-axis roll by L/2 (direction-free).
    x2s = pltpu.roll(x2, roll_shift, 0)
    o_ref[...] = (x1 + x2s).astype(o_ref.dtype)


def _vmem_capacity_bytes():
    try:
        return int(pltpu.get_tpu_info().vmem_capacity_bytes)
    except Exception:
        return 64 * 1024 * 1024                  # conservative (v7x per-TC)


def _pick_batch_block(n, bytes_per_sample, budget):
    """Largest divisor of n whose block fits the VMEM budget, preferring
    >= 2 grid blocks so v7x's two TensorCores both get work."""
    divisors = [d for d in range(1, n + 1) if n % d == 0]
    fit = [d for d in divisors if d * bytes_per_sample <= budget] or [1]
    pref = [d for d in fit if n // d >= 2]
    return max(pref) if pref else max(fit)


def sru_forward(x, gamma, beta, group_num, gate_threshold=0.5, eps=1e-10):
    """SRU forward. x: (N, C, H, W); gamma/beta broadcastable to (C,)."""
    N, C, H, W = x.shape
    HW = H * W
    G = group_num
    assert C >= G and C % G == 0 and C % 2 == 0
    cpg = C // G

    # --- generation-aware VMEM budgets --------------------------------------
    vmem_cap = _vmem_capacity_bytes()            # 128 MiB v5e/v6e, 64 MiB v7x
    vmem_limit = (vmem_cap * 3) // 4             # 96 MiB / 48 MiB scoped limit
    block_budget = min(8 << 20, vmem_limit // 6)  # ~4x block (dbl-buf io) + consts

    # --- spatial padding only when HW is small & awkward --------------------
    # TODO(synk): for tiny HW (<64) pack several samples' spatial extent along
    # the lane axis instead of padding each sample to 128 lanes.
    if HW % 128 == 0 or HW >= 512:
        HWp = HW                                 # full-dim last block dim is legal
    else:
        HWp = ((HW + 127) // 128) * 128
    pad_cols = HWp - HW

    itemsize = jnp.dtype(x.dtype).itemsize
    bytes_per_sample = C * HWp * itemsize
    bn = _pick_batch_block(N, bytes_per_sample, block_budget)
    nb = N // bn
    L = bn * C
    BG = bn * G

    # --- input layout: (nb, L, HWp), rows channel-major interleaved ---------
    xr = x.reshape(N, C, HW)
    if pad_cols:
        xr = jnp.pad(xr, ((0, 0), (0, 0), (0, pad_cols)))
    if bn > 1:
        # row = c*bn + s   (only small tensors ever take this path)
        xr = xr.reshape(nb, bn, C, HWp).transpose(0, 2, 1, 3).reshape(nb, L, HWp)
    else:
        xr = xr.reshape(nb, L, HWp)

    gamma = gamma.reshape(-1).astype(jnp.float32)
    beta = beta.reshape(-1).astype(jnp.float32)
    w_gamma = gamma / jnp.sum(gamma)             # grid-invariant -> hoisted
    coef = jnp.stack([jnp.repeat(gamma * w_gamma, bn),
                      jnp.repeat(beta * w_gamma, bn)], axis=1)          # (L, 2)

    # Block-diagonal one-hot (sample, group) selector for channel-major rows.
    sel_np = np.zeros((BG, L), np.float32)
    for c in range(C):
        g = c // cpg
        for s in range(bn):
            sel_np[g * bn + s, c * bn + s] = 1.0

    # Pre-sigmoid threshold (sigmoid is monotonic).
    if gate_threshold <= 0.0:
        thr = -float("inf")
    elif gate_threshold >= 1.0:
        thr = float("inf")
    else:
        thr = math.log(gate_threshold / (1.0 - gate_threshold))

    kernel = functools.partial(
        _sru_kernel,
        n_per_group=float(cpg * HW),
        eps=float(eps),
        thr=float(thr),
        roll_shift=L // 2,
        valid_cols=HW,
        masked=bool(pad_cols),
    )

    # TODO(synk): very large single samples (block >> vmem budget) need a
    # second "parallel" grid axis over HW chunks with a two-pass accumulate
    # scheme; that also feeds v7x megacore when N == 1.
    out = pl.pallas_call(
        kernel,
        out_shape=jax.ShapeDtypeStruct((nb, L, HWp), x.dtype),
        grid=(nb,),
        in_specs=[
            pl.BlockSpec((None, L, HWp), lambda n: (n, 0, 0)),   # x block
            pl.BlockSpec((L, 2), lambda n: (0, 0)),              # per-row coefs
            pl.BlockSpec((BG, L), lambda n: (0, 0)),             # group selector
            pl.BlockSpec((L, BG), lambda n: (0, 0)),             # selector^T
        ],
        out_specs=pl.BlockSpec((None, L, HWp), lambda n: (n, 0, 0)),
        compiler_params=pltpu.CompilerParams(
            dimension_semantics=("parallel",),
            vmem_limit_bytes=int(vmem_limit),
        ),
    )(xr, coef, jnp.asarray(sel_np), jnp.asarray(sel_np.T))

    if bn > 1:
        out = out.reshape(nb, C, bn, HWp).transpose(0, 2, 1, 3)
    out = out.reshape(N, C, HWp)
    if pad_cols:
        out = out[:, :, :HW]
    return out.reshape(N, C, H, W)


def sru_reference(x, gamma, beta, group_num, gate_threshold=0.5, eps=1e-10):
    """Pure-JAX reference matching the PyTorch forward semantics."""
    N, C, H, W = x.shape
    xg = x.reshape(N, group_num, -1)
    mean = xg.mean(axis=2, keepdims=True)
    std = jnp.std(xg, axis=2, keepdims=True, ddof=1)   # torch.std is unbiased
    xn = ((xg - mean) / (std + eps)).reshape(N, C, H, W)
    g = gamma.reshape(1, C, 1, 1)
    gn_x = xn * g + beta.reshape(1, C, 1, 1)
    w_gamma = g / jnp.sum(gamma)
    rew = jax.nn.sigmoid(gn_x * w_gamma)
    info = rew >= gate_threshold
    x1 = jnp.where(info, x, 0.0)
    x2 = jnp.where(~info, x, 0.0)
    half = C // 2
    return jnp.concatenate(
        [x1[:, :half] + x2[:, half:], x1[:, half:] + x2[:, :half]], axis=1)


if __name__ == "__main__":
    # SRU(oup_channels=8, group_num=4, gate_threshold=0.5)
    N, C, H, W = 2, 8, 16, 16
    G = 4

    key = jax.random.PRNGKey(0)
    kx, kg = jax.random.split(key)
    x = jax.random.normal(kx, (N, C, H, W), dtype=jnp.float32)
    gamma = jax.random.normal(kg, (C,), dtype=jnp.float32)   # torch.randn(c_num,1,1)
    beta = jnp.zeros((C,), dtype=jnp.float32)                # torch.zeros(c_num,1,1)

    out = sru_forward(x, gamma, beta, group_num=G, gate_threshold=0.5, eps=1e-10)
    out = jax.block_until_ready(out)

    ref = sru_reference(x, gamma, beta, group_num=G, gate_threshold=0.5, eps=1e-10)
    np.testing.assert_allclose(np.asarray(out), np.asarray(ref), rtol=1e-4, atol=1e-4)

    print("KERNEL_OK")
</pallas_src>

<mosaic_0001>
module attributes {stable_mosaic.version = 11 : i64} {
  func.func @_sru_kernel(%arg0: i32, %arg1: memref<1x8x256xf32, #tpu.memory_space<vmem>>, %arg2: memref<8x2xf32, #tpu.memory_space<vmem>>, %arg3: memref<4x8xf32, #tpu.memory_space<vmem>>, %arg4: memref<8x4xf32, #tpu.memory_space<vmem>>, %arg5: memref<1x8x256xf32, #tpu.memory_space<vmem>>) attributes {dimension_semantics = [#tpu.dimension_semantics<parallel>], iteration_bounds = array<i64: 2>, scalar_prefetch = 0 : i64, scratch_operands = 0 : i64, tpu.core_type = #tpu.core_type<tc>, window_params = [{transform_indices = @transform_0, window_bounds = array<i64: 1, 8, 256>}, {pipeline_mode = #tpu.pipeline_mode<synchronous>, transform_indices = @transform_1, window_bounds = array<i64: 8, 2>}, {pipeline_mode = #tpu.pipeline_mode<synchronous>, transform_indices = @transform_2, window_bounds = array<i64: 4, 8>}, {pipeline_mode = #tpu.pipeline_mode<synchronous>, transform_indices = @transform_3, window_bounds = array<i64: 8, 4>}, {transform_indices = @transform_4, window_bounds = array<i64: 1, 8, 256>}]} {
    %c0 = arith.constant 0 : index
    %c0_0 = arith.constant 0 : index
    %c0_1 = arith.constant 0 : index
    %0 = vector.load %arg1[%c0, %c0_0, %c0_1] : memref<1x8x256xf32, #tpu.memory_space<vmem>>, vector<1x8x256xf32>
    %1 = vector.shape_cast %0 : vector<1x8x256xf32> to vector<8x256xf32>
    %c0_2 = arith.constant 0 : index
    %c0_3 = arith.constant 0 : index
    %2 = vector.load %arg2[%c0_2, %c0_3] : memref<8x2xf32, #tpu.memory_space<vmem>>, vector<8x1xf32>
    %c0_4 = arith.constant 0 : index
    %c1 = arith.constant 1 : index
    %3 = vector.load %arg2[%c0_4, %c1] : memref<8x2xf32, #tpu.memory_space<vmem>>, vector<8x1xf32>
    %c0_5 = arith.constant 0 : index
    %c0_6 = arith.constant 0 : index
    %4 = vector.load %arg3[%c0_5, %c0_6] : memref<4x8xf32, #tpu.memory_space<vmem>>, vector<4x8xf32>
    %c0_7 = arith.constant 0 : index
    %c0_8 = arith.constant 0 : index
    %5 = vector.load %arg4[%c0_7, %c0_8] : memref<8x4xf32, #tpu.memory_space<vmem>>, vector<8x4xf32>
    %cst = arith.constant dense<0.000000e+00> : vector<8xf32>
    %6 = vector.multi_reduction <add>, %1, %cst [1] : vector<8x256xf32> to vector<8xf32>
    %7 = vector.shape_cast %6 : vector<8xf32> to vector<8x1xf32>
    %cst_9 = arith.constant dense<0.000000e+00> : vector<4x1xf32>
    %8 = tpu.matmul %4, %7, %cst_9 {dimension_numbers = #tpu.dot_dimension_numbers<[1], [0], [0], [1], [0, 0, 1, 1], [], []>} : vector<4x8xf32>, vector<8x1xf32>, vector<4x1xf32> -> vector<4x1xf32>
    %cst_10 = arith.constant 0.001953125 : f32
    %9 = vector.broadcast %cst_10 : f32 to vector<4x1xf32>
    %10 = arith.mulf %8, %9 : vector<4x1xf32>
    %cst_11 = arith.constant dense<0.000000e+00> : vector<8x1xf32>
    %11 = tpu.matmul %5, %10, %cst_11 {dimension_numbers = #tpu.dot_dimension_numbers<[1], [0], [0], [1], [0, 0, 1, 1], [], []>} : vector<8x4xf32>, vector<4x1xf32>, vector<8x1xf32> -> vector<8x1xf32>
    %12 = vector.broadcast %11 : vector<8x1xf32> to vector<8x256xf32>
    %13 = arith.subf %1, %12 : vector<8x256xf32>
    %14 = arith.mulf %13, %13 : vector<8x256xf32>
    %cst_12 = arith.constant dense<0.000000e+00> : vector<8xf32>
    %15 = vector.multi_reduction <add>, %14, %cst_12 [1] : vector<8x256xf32> to vector<8xf32>
    %16 = vector.shape_cast %15 : vector<8xf32> to vector<8x1xf32>
    %cst_13 = arith.constant dense<0.000000e+00> : vector<4x1xf32>
    %17 = tpu.matmul %4, %16, %cst_13 {dimension_numbers = #tpu.dot_dimension_numbers<[1], [0], [0], [1], [0, 0, 1, 1], [], []>} : vector<4x8xf32>, vector<8x1xf32>, vector<4x1xf32> -> vector<4x1xf32>
    %cst_14 = arith.constant 0.00195694715 : f32
    %18 = vector.broadcast %cst_14 : f32 to vector<4x1xf32>
    %19 = arith.mulf %17, %18 : vector<4x1xf32>
    %20 = math.sqrt %19 : vector<4x1xf32>
    %cst_15 = arith.constant 1.000000e-10 : f32
    %21 = vector.broadcast %cst_15 : f32 to vector<4x1xf32>
    %22 = arith.addf %20, %21 : vector<4x1xf32>
    %cst_16 = arith.constant 1.000000e+00 : f32
    %23 = vector.broadcast %cst_16 : f32 to vector<4x1xf32>
    %24 = arith.divf %23, %22 : vector<4x1xf32>
    %cst_17 = arith.constant dense<0.000000e+00> : vector<8x1xf32>
    %25 = tpu.matmul %5, %24, %cst_17 {dimension_numbers = #tpu.dot_dimension_numbers<[1], [0], [0], [1], [0, 0, 1, 1], [], []>} : vector<8x4xf32>, vector<4x1xf32>, vector<8x1xf32> -> vector<8x1xf32>
    %26 = arith.mulf %25, %2 : vector<8x1xf32>
    %27 = vector.broadcast %26 : vector<8x1xf32> to vector<8x256xf32>
    %28 = arith.mulf %13, %27 : vector<8x256xf32>
    %29 = vector.broadcast %3 : vector<8x1xf32> to vector<8x256xf32>
    %30 = arith.addf %28, %29 : vector<8x256xf32>
    %cst_18 = arith.constant 0.000000e+00 : f32
    %31 = vector.broadcast %cst_18 : f32 to vector<8x256xf32>
    %32 = arith.cmpf oge, %30, %31 : vector<8x256xf32>
    %cst_19 = arith.constant 0.000000e+00 : f32
    %33 = vector.broadcast %cst_19 : f32 to vector<8x256xf32>
    %34 = arith.select %32, %1, %33 : vector<8x256xi1>, vector<8x256xf32>
    %35 = arith.subf %1, %34 : vector<8x256xf32>
    %c4_i32 = arith.constant 4 : i32
    %36 = tpu.dynamic_rotate %35 by %c4_i32 dim 0 : vector<8x256xf32>, i32 -> vector<8x256xf32>
    %37 = arith.addf %34, %36 : vector<8x256xf32>
    %c0_20 = arith.constant 0 : index
    %c0_21 = arith.constant 0 : index
    %c0_22 = arith.constant 0 : index
    %38 = vector.load %arg5[%c0_20, %c0_21, %c0_22] : memref<1x8x256xf32, #tpu.memory_space<vmem>>, vector<1x8x256xf32>
    %39 = vector.shape_cast %38 : vector<1x8x256xf32> to vector<8x256xf32>
    %40 = vector.shape_cast %37 : vector<8x256xf32> to vector<1x8x256xf32>
    tpu.vector_store %arg5[%c0_20, %c0_21, %c0_22], %40 {strides = array<i32>} : memref<1x8x256xf32, #tpu.memory_space<vmem>>, vector<1x8x256xf32>,
    return
  }
  func.func @transform_0(%arg0: i32) -> (i32, i32, i32) {
    %c0_i32 = arith.constant 0 : i32
    %c0_i32_0 = arith.constant 0 : i32
    %c0_i32_1 = arith.constant 0 : i32
    return %arg0, %c0_i32, %c0_i32_0 : i32, i32, i32
  }
  func.func @transform_1(%arg0: i32) -> (i32, i32) {
    %c0_i32 = arith.constant 0 : i32
    %c0_i32_0 = arith.constant 0 : i32
    %c0_i32_1 = arith.constant 0 : i32
    return %c0_i32, %c0_i32_0 : i32, i32
  }
  func.func @transform_2(%arg0: i32) -> (i32, i32) {
    %c0_i32 = arith.constant 0 : i32
    %c0_i32_0 = arith.constant 0 : i32
    %c0_i32_1 = arith.constant 0 : i32
    return %c0_i32, %c0_i32_0 : i32, i32
  }
  func.func @transform_3(%arg0: i32) -> (i32, i32) {
    %c0_i32 = arith.constant 0 : i32
    %c0_i32_0 = arith.constant 0 : i32
    %c0_i32_1 = arith.constant 0 : i32
    return %c0_i32, %c0_i32_0 : i32, i32
  }
  func.func @transform_4(%arg0: i32) -> (i32, i32, i32) {
    %c0_i32 = arith.constant 0 : i32
    %c0_i32_0 = arith.constant 0 : i32
    %c0_i32_1 = arith.constant 0 : i32
    return %arg0, %c0_i32, %c0_i32_0 : i32, i32, i32
  }
}

</mosaic_0001>

<bundles_post_ra>
// kernel: tpu_custom_call.1
= control target key start
LH: loop header
LB: loop body
LE: loop exit
PB: predicated region body
PF: predicated region fallthrough
CT: control target
= control target key end

     0   :  { %9 = vsyncpa [#allocation3], 0  ;;  %s1068_s0 = inlined_call_operand.hbm [shape: f32[2,8,256], index: 0, kind: input, shape index: {}]   ;;  %s1069_s1 = inlined_call_operand.vmem [shape: f32[8,2], index: 1, kind: input, shape index: {}]   ;;  %s1070_s2 = inlined_call_operand.vmem [shape: f32[4,8], index: 2, kind: input, shape index: {}]   ;;  %s1071_s3 = inlined_call_operand.vmem [shape: f32[8,4], index: 3, kind: input, shape index: {}]   ;;  %s1072_s4 = inlined_call_operand.hbm [shape: f32[2,8,256], index: 4, kind: output, shape index: {}]  }
   0x1   :  { %11 = vsyncpa [#allocation3 + $0x1], 0 }
   0x2   :  { %12 = vsyncpa [#allocation4], 0 }
   0x3   :  { %14 = vsyncpa [#allocation4 + $0x1], 0  ;;  %s886_s15 = smov 0   ;;  %s888_s16 = smov 0  }
   0x4   :  { %s890_s17 = smov 0   ;;  %s892_s18 = smov 0  }
   0x5 LB: > { %s907_s19 = sadd.s32 4294967295, %s853_s18   ;;  %s653_s20 = sadd.s32 4294967294, %s853_s18   ;;  %s853_s18 = sphi %s892_s18, %s1089_s18   ;;  %s849_s17 = sphi %s890_s17, %s1088_s17   ;;  %s845_s16 = sphi %s888_s16, %s1087_s16   ;;  %s841_s15 = sphi %s886_s15, %s1086_s15  }
   0x6   : > { %s911_s21 = sadd.s32 1, %s853_s18   ;;  %s27_s22 = sadd.s32 1, %s849_s17 }
   0x7   : > { %s24_s23 = ssub.s32 %s853_s18, %s911_s21  ;;  %p34_p0 = scmp.ne.s32.totalorder %s849_s17, %s845_s16 }
   0x8   : > { %p25_p1 = scmp.eq.s32.totalorder %s24_s23, 0  ;;  %p35_p2 = scmp.eq.s32.totalorder %s853_s18, 0 }
   0x9   : > { %p40_p3 = scmp.ne.s32.totalorder %s845_s16, %s841_s15  ;;  %p41_p4 = scmp.eq.s32.totalorder %s907_s19, 0 }
   0xa   : > { %s923_s24 = scalar_select %p25_p1, %s849_s17, %s27_s22  }
   0xb   : > { %p925_p5 = por %p35_p2, %p34_p0  ;;  %p929_p6 = por %p41_p4, %p40_p3 }
   0xc   : > { %p127_p7 = scmp.eq.s32.totalorder %s907_s19, 1  ;;  %p133_p8 = scmp.eq.s32.totalorder %s653_s20, 1 }
   0xd   : > { %s1076_s26 = scalar_select %p929_p6, 1, 0 }
   0xe   : > { %p715_p10 = scmp.lt.s32.totalorder %s853_s18, 2  ;;  %p936_p11 = por %p127_p7, %p34_p0 }
   0xf   : > { %p940_p12 = por %p133_p8, %p40_p3  ;;  %s162_s29 = sand.u32 1, %s849_s17  }
  0x10   : > { %s1077_s27 = scalar_select %p936_p11, 1, 0 }
  0x11   : > { %s1078_s28 = scalar_select %p940_p12, 1, 0 }
  0x12   : > { %s673_s30 = sshll.u32 %s853_s18, 8  ;;  %s656_s5 = sshll.u32 %s162_s29, 4 }
  0x13   : > { %s949_s8 = scalar_lea.hbm %s1068_s0, %s673_s30  ;;  %s166_s9 = scalar_lea.vmem [#allocation2], %s656_s5 }
  0x14   : > { %s174_s10 = sshll.u32 %s166_s9, 4  ;;  %p953_p13 = pnand %p715_p10, %p925_p5  ;;  %s957_s10 = int_to_ptr.vmem [resolvable:$true] %s174_s10 }
  0x15   : > { %s163_s12 = scalar_lea.sflag [#allocation3], %s162_s29  ;;  %s761_s13 = scalar_lea.hbm %s949_s8, 256 }
  0x16   : > { %p762_p2 = scmp.ne.s32.totalorder %s949_s8, %s761_s13  ;;  %p763_p3 = pneg %p953_p13 }
  0x17   : > { %s766_s22 = scalar_lea.hbm %s1068_s0, 512  ;;  %p767_p5 = scmp.lt.s32.totalorder %s949_s8, %s1068_s0 }
  0x18   : > { %p764_p4 = pnand %p763_p3, %p762_p2  ;;  %p768_p8 = scmp.lt.s32.totalorder %s766_s22, %s761_s13 }
  0x1a   : > { %p765_p7 = pneg %p764_p4  ;;  %p769_p10 = por %p768_p8, %p767_p5 }
  0x1c   : > { %p770_p9 = pnand %p769_p10, %p765_p7 }
  0x1e   : > { %773 = shalt.err (!%p770_p9)
}
  0x1f   : > { %s774_s29 = scalar_lea.vmem %s957_s10, 256  ;;  %s855_s30 = smov [#allocation2]  }
  0x20   : > { %p775_p0 = scmp.ne.s32.totalorder %s957_s10, %s774_s29  ;;  %s779_s5 = sshll.u32 %s855_s30, 4  ;;  %s780_s5 = int_to_ptr.vmem [resolvable:$false] %s779_s5 }
  0x21   : > { %s781_s6 = scalar_lea.vmem %s780_s5, 512  ;;  %p782_p4 = scmp.lt.s32.totalorder %s957_s10, %s780_s5 }
  0x22   : > { %p777_p1 = pnand %p775_p0, %p763_p3  ;;  %p783_p12 = scmp.lt.s32.totalorder %s781_s6, %s774_s29 }
  0x24   : > { %p778_p2 = pneg %p777_p1  ;;  %p784_p11 = por %p783_p12, %p782_p4 }
  0x26   : > { %p785_p6 = pnand %p784_p11, %p778_p2 }
  0x28   : > { %788 = shalt.err (!%p785_p6)
}
  0x29   : > { %710 = dma.hbm_to_vmem [thread:$0]  (!%p953_p13), %s949_s8, 256, %s957_s10, %s163_s12  }
  0x2a   : > { %p1080_p9 = scmp.lt.s32.totalorder %s853_s18, 3  ;;  %p1081_p7 = scmp.ge.s32.totalorder %s853_s18, 1 }
  0x2c   : > { %p180_p0 = pnand %p1081_p7, %p1080_p9 }
  0x2d   : > { %s984_s7 = sand.u32 (!%p180_p0), 1, %s845_s16   ;;  %p1082_p6 = scmp.ne.s32.totalorder (!%p180_p0), %s1076_s26, 0 }
  0x2e   : > { %183 = sbr.rel (%p180_p0) target bundleno = 1429 (0x595), region = 36  ;;  %s660_s9 = sshll.u32 (!%p180_p0), %s984_s7, 4 }
  0x2f   : > { %s186_s13 = scalar_lea.sflag (!%p180_p0), [#allocation3], %s984_s7  ;;  %s189_s11 = scalar_lea.vmem (!%p180_p0), [#allocation2], %s660_s9 }
  0x33   : > { %832 = dma.done.wait (%p1082_p6), %s186_s13, 256  }
  0x34   : > { %834 = vsyncadd (%p1082_p6), %s186_s13, 4294967040  ;;  %v856_v0 = vmov 0.0   ;;  %v994_v1 = vld [vmem:[%s189_s11] sm:$0xff]  ;;  %v996_v2 = vld [vmem:[%s189_s11 + $0x8] sm:$0xff]  ;;  %vm857_vm0 = vmmov 0   ;;  %vm222_vm1 = vcmask 64512  }
  0x35   : > { %683 = vmatprep.subr.mxu0 %v856_v0  ;;  %688 = vmatprep.subr.mxu1 %v856_v0  ;;  %v219_v3 = vadd.f32 %v996_v2, %v994_v1  ;;  %v217_v4 = vld [vmem:[%s1070_s2] sm:$0xf]  ;;  %v858_v6 = vmov 0   ;;  %vm301_vm2 = vcmask 1043456   ;;  %vm297_vm3 = vcmask 31744   ;;  %s674_s22 = sshll.u32 %s907_s19, 8 }
  0x36   : > { %685 = vmatprep.mubr.msk.f32.mxu0 %vm857_vm0, %v856_v0  ;;  %690 = vmatprep.mubr.msk.f32.mxu1 %vm857_vm0, %v856_v0  ;;  %v218_v9 = vld [vmem:[%s1071_s3] sm:$0xff]  ;;  %v859_v30 = vmov 1   ;;  %s213_s23 = scalar_lea.vmem [#allocation5], %s660_s9  ;;  %s1031_s5 = scalar_lea.hbm %s1072_s4, %s674_s22 }
  0x37   : > { %220 = vadd.xlane.f32.xlu0 %v219_v3  ;;  %754 = vset.pattern.permute.xlu1 %v858_v6  ;;  %v216_v31 = vld [vmem:[%s1069_s1] sm:$0xff]  ;;  %s583_s25 = sshll.u32 %s213_s23, 4  ;;  %s569_s6 = scalar_lea.sflag [#allocation4], %s984_s7  ;;  %s584_s25 = int_to_ptr.vmem [resolvable:$true] %s583_s25 }
  0x38   : > { %753 = vset.pattern.permute.xlu0 %v858_v6  ;;  %s789_s13 = scalar_lea.vmem %s584_s25, 256  ;;  %p1083_p12 = scmp.ne.s32.totalorder %s1077_s27, 0 }
  0x39   : > { %p790_p11 = scmp.ne.s32.totalorder %s584_s25, %s789_s13  ;;  %s860_s19 = smov [#allocation5]  }
  0x3a   : > { %s793_s9 = sshll.u32 %s860_s19, 4  ;;  %s794_s9 = int_to_ptr.vmem [resolvable:$false] %s793_s9 }
  0x3b   : > { %p791_p13 = pnand %p790_p11, %p1083_p12  ;;  %s795_s11 = scalar_lea.vmem %s794_s9, 512 }
  0x3c   : > { %p796_p3 = scmp.lt.s32.totalorder %s584_s25, %s794_s9  ;;  %p797_p5 = scmp.lt.s32.totalorder %s795_s11, %s789_s13 }
  0x3d   : > { %p792_p1 = pneg %p791_p13 }
  0x3e   : > { %p798_p8 = por %p797_p5, %p796_p3 }
  0x40   : > { %p799_p10 = pnand %p798_p8, %p792_p1 }
  0xc0   : > { %v221_v5 = vpop.xlane.xlu0 %220 }
  0xc1   : > { %684 = vmatpush3.msra.mxu0 %v221_v5 }
  0xc2   : > { %686 = vmatmul.mubr.msk.f32.vlgmr.msra.gmra.mxu0 %vm222_vm1, %v217_v4  ;;  %693 = vmatprep.subr.mxu0 %v856_v0 }
  0xc3   : > { %695 = vmatprep.mubr.msk.f32.mxu0 %vm857_vm0, %v856_v0 }
 0x182   : > { %v292_v7 = vpop.f32.mrf.mxu0 }
 0x183   : > { %v296_v8 = vmul.f32 0.001953125, %v292_v7 }
 0x184   : > { %v687_v10 = vpop.f32.mrf.mxu0 }
 0x185   : > { %689 = vmatpush3.msk.msra.mxu1 %vm301_vm2, %v296_v8 }
 0x186   : > { %691 = vmatmul.mubr.msk.f32.vlgmr.msra.gmra.mxu1 %vm297_vm3, %v218_v9  ;;  %698 = vmatprep.subr.mxu1 %v856_v0 }
 0x187   : > { %700 = vmatprep.mubr.msk.f32.mxu1 %vm857_vm0, %v856_v0 }
 0x246   : > { %v371_v11 = vpop.f32.mrf.mxu1 }
 0x247   : > { %377 = vperm.xlu0 %753, %v371_v11  }
 0x248   : > { %v692_v12 = vpop.f32.mrf.mxu1 }
 0x24b   : > { %756 = vset.pattern.permute.xlu0 %v859_v30 }
 0x2c2   : > { %v378_v13 = vpop.permute.xlu0 %377 }
 0x2c3   : > { %v380_v14 = vsub.f32 %v994_v1, %v378_v13  ;;  %v381_v15 = vsub.f32 %v996_v2, %v378_v13 }
 0x2c5   : > { %v382_v16 = vmul.f32 %v380_v14, %v380_v14  ;;  %v383_v17 = vmul.f32 %v381_v15, %v381_v15 }
 0x2c7   : > { %v384_v18 = vadd.f32 %v383_v17, %v382_v16 }
 0x2c9   : > { %385 = vadd.xlane.f32.xlu1 %v384_v18 }
 0x352   : > { %v386_v19 = vpop.xlane.xlu1 %385 }
 0x353   : > { %694 = vmatpush3.msra.mxu0 %v386_v19 }
 0x354   : > { %696 = vmatmul.mubr.msk.f32.vlgmr.msra.gmra.mxu0 %vm222_vm1, %v217_v4 }
 0x414   : > { %v453_v20 = vpop.f32.mrf.mxu0 }
 0x415   : > { %v457_v21 = vmul.f32 0.0019569471, %v453_v20 }
 0x416   : > { %v697_v22 = vpop.f32.mrf.mxu0 }
 0x417   : > { %757 = vrsqrt.f32 %v457_v21  ;;  %vm460_vm4 = vcmp.eq.f32.partialorder %v457_v21, inf  ;;  %v463_v25 = vand.u32 2147483648, %v457_v21  ;;  %vm462_vm5 = vcmp.eq.f32.partialorder %v457_v21, 0.0 }
 0x424   : > { %v758_v23 = vpop.eup %757 }
 0x425   : > { %v459_v24 = vmul.f32 %v758_v23, %v457_v21 }
 0x427   : > { %v461_v26 = vsel %vm460_vm4, %v457_v21, %v459_v24 }
 0x428   : > { %v464_v27 = vsel %vm462_vm5, %v463_v25, %v461_v26 }
 0x429   : > { %v465_v28 = vadd.f32 1e-10, %v464_v27 }
 0x42b   : > { %759 = vrcp.f32 %v465_v28 }
 0x438   : > { %v760_v29 = vpop.eup %759 }
 0x439   : > { %699 = vmatpush3.msk.msra.mxu1 %vm301_vm2, %v760_v29 }
 0x43a   : > { %701 = vmatmul.mubr.msk.f32.vlgmr.msra.gmra.mxu1 %vm297_vm3, %v218_v9 }
 0x4fa   : > { %v537_v32 = vpop.f32.mrf.mxu1 }
 0x4fb   : > { %v541_v33 = vmul.f32 %v537_v32, %v216_v31 }
 0x4fc   : > { %v702_v34 = vpop.f32.mrf.mxu1 }
 0x4fd   : > { %544 = vperm.xlu1 %754, %v541_v33  }
 0x501   : > { %755 = vset.pattern.permute.xlu1 %v859_v30 }
 0x502   : > { %551 = vperm.xlu1 %755, %v216_v31  }
 0x578   : > { %v545_v35 = vpop.permute.xlu1 %544 }
 0x579   : > { %v547_v36 = vmul.f32 %v545_v35, %v380_v14  ;;  %v548_v37 = vmul.f32 %v545_v35, %v381_v15 }
 0x57d   : > { %v552_v38 = vpop.permute.xlu1 %551 }
 0x57e   : > { %v554_v39 = vadd.f32 %v552_v38, %v547_v36  ;;  %v555_v40 = vadd.f32 %v552_v38, %v548_v37 }
 0x580   : > { %vm556_vm6 = vcmp.ge.f32.partialorder %v554_v39, 0.0  ;;  %vm557_vm7 = vcmp.ge.f32.partialorder %v555_v40, 0.0 }
 0x581   : > { %v558_v41 = vsel %vm556_vm6, %v994_v1, 0.0  ;;  %v559_v42 = vsel %vm557_vm7, %v996_v2, 0.0 }
 0x582   : > { %v560_v43 = vsub.f32 %v994_v1, %v558_v41  ;;  %v561_v44 = vsub.f32 %v996_v2, %v559_v42 }
 0x584   : > { %v562_v45 = vrot.slane %v560_v43, 4  ;;  %v563_v46 = vrot.slane %v561_v44, 4 }
 0x586   : > { %v564_v47 = vadd.f32 %v562_v45, %v558_v41  ;;  %v565_v48 = vadd.f32 %v563_v46, %v559_v42 }
 0x588   : > { %566 = vst [vmem:[%s213_s23] sm:$0xff] %v564_v47  ;;  %567 = vst [vmem:[%s213_s23 + $0x8] sm:$0xff] %v565_v48 }
 0x589   : > { %802 = shalt.err (!%p799_p10)
}
 0x58a   : > { %s803_s8 = scalar_lea.hbm %s1031_s5, 256  ;;  %s807_s26 = scalar_lea.hbm %s1072_s4, 512 }
 0x58b   : > { %p804_p2 = scmp.ne.s32.totalorder %s1031_s5, %s803_s8  ;;  %p808_p7 = scmp.lt.s32.totalorder %s1031_s5, %s1072_s4 }
 0x58c   : > { %p809_p0 = scmp.lt.s32.totalorder %s807_s26, %s803_s8 }
 0x58d   : > { %p805_p4 = pnand %p804_p2, %p1083_p12 }
 0x58e   : > { %p810_p6 = por %p809_p0, %p808_p7 }
 0x58f   : > { %p806_p9 = pneg %p805_p4 }
 0x591   : > { %p811_p11 = pnand %p810_p6, %p806_p9 }
 0x593   : > { %814 = shalt.err (!%p811_p11)
}
 0x594   : > { %705 = dma.vmem_to_hbm [thread:$0]  (%p1083_p12), %s584_s25, 256, %s1031_s5, %s569_s6  }
 0x595 PF: > { %s595_s20 = sand.u32 1, %s841_s15   ;;  %p1084_p13 = scmp.ne.s32.totalorder %s1078_s28, 0 }
 0x596   : > { %p1085_p1 = scmp.ge.s32.totalorder %s853_s18, 2  ;;  %s596_s22 = scalar_lea.sflag [#allocation4], %s595_s20 }
 0x598   : > { %p712_p3 = pnand %p1085_p1, %p1084_p13 }
 0x59a   : > { %p713_p5 = pneg %p712_p3 }
 0x59c   : > { %836 = dma.done.wait (%p713_p5), %s596_s22, 256  }
 0x59d   : > { %838 = vsyncadd (%p713_p5), %s596_s22, 4294967040  ;;  %p17_p8 = scmp.ge.s32.totalorder %s911_s21, 4   ;;  %s1086_s15 = smov %s845_s16 }
 0x59e   : > { %s1087_s16 = smov %s849_s17  ;;  %s1088_s17 = smov %s923_s24 }
 0x59f   : > { %s1089_s18 = smov %s911_s21  ;;  %19 = sbr.rel (!%p17_p8) target bundleno = 5 (0x5), region = 81 }
 0x5a4   :  { %601 = vsyncpa [#allocation3], 1 }
 0x5a5   :  { %603 = vsyncpa [#allocation3 + $0x1], 1 }
 0x5a6   :  { %604 = vsyncpa [#allocation4], 1 }
 0x5a7   :  { %606 = vsyncpa [#allocation4 + $0x1], 1 }

</bundles_post_ra>
